<compile_context>
chip_gen: v5e
topology: v5e:2x2
jax: 0.10.0
libtpu: 0.0.40
codegen_flags: <defaults>
</compile_context>

<pallas_src>
import functools

import jax
import jax.numpy as jnp
from jax.experimental import pallas as pl
from jax.experimental.pallas import tpu as pltpu

LANES = 128  # lane width of a vreg; lane-dense layout -> unmasked vst


def _round_up(a: int, b: int) -> int:
    return ((a + b - 1) // b) * b


def _custom_sigmoid_kernel(x_ref, o_ref, *, scale):
    # x_ref / o_ref: (tm, 128) tiles.  Pure VPU/EUP elementwise work.
    x = x_ref[...].astype(jnp.float32)
    o_ref[...] = (scale * jax.nn.sigmoid(x)).astype(o_ref.dtype)


def custom_sigmoid(x, beta=1, block_bytes=2 * 1024 * 1024):
    """out = len(x) * sigmoid(x).  `beta` is unused (matches the module)."""
    del beta  # unused in the PyTorch forward as well
    scale = float(x.shape[0])                 # len(x) on a tensor == shape[0]
    orig_shape = x.shape
    dtype = x.dtype
    n = x.size

    itemsize = jnp.dtype(dtype).itemsize
    # Min sublane multiple per dtype packing: 8 (32-bit), 16 (16-bit), 32 (8-bit).
    sublane = {4: 8, 2: 16, 1: 32}.get(itemsize, 8)

    # Flatten to a lane-dense [rows, 128] layout.  Only pad when the element
    # count is not a multiple of 128 (rare); the row-axis tail is handled by
    # Pallas partial-block masking, not by padding.
    rows = pl.cdiv(n, LANES)
    needs_pad = (n % LANES) != 0

    flat = jnp.ravel(x)
    if needs_pad:
        flat = jnp.pad(flat, (0, rows * LANES - n))
    x2 = flat.reshape(rows, LANES)

    # ~block_bytes per tile, capped so mid-size tensors keep >= ~4 grid steps
    # (megacore sharding on v7x + DMA/compute overlap), floored at one
    # sublane group.
    tm = max(block_bytes // (LANES * itemsize), sublane)
    tm = min(tm, _round_up(pl.cdiv(rows, 4), sublane))
    tm = _round_up(tm, sublane)

    grid = (pl.cdiv(rows, tm),)

    kernel = functools.partial(_custom_sigmoid_kernel, scale=scale)
    out2 = pl.pallas_call(
        kernel,
        out_shape=jax.ShapeDtypeStruct((rows, LANES), dtype),
        grid_spec=pltpu.PrefetchScalarGridSpec(
            num_scalar_prefetch=0,
            grid=grid,
            in_specs=[pl.BlockSpec((tm, LANES), lambda i: (i, 0))],
            out_specs=pl.BlockSpec((tm, LANES), lambda i: (i, 0)),
        ),
        compiler_params=pltpu.CompilerParams(
            dimension_semantics=("parallel",),   # megacore / 2-TC sharding
        ),
    )(x2)

    if needs_pad:
        return out2.reshape(-1)[:n].reshape(orig_shape)
    return out2.reshape(orig_shape)


def reference(x):
    return x.shape[0] * jax.nn.sigmoid(x)


if __name__ == "__main__":
    key = jax.random.PRNGKey(0)
    k1, k2 = jax.random.split(key)

    # Shapes consistent with the GTN2 usage: batch=2, seq=8, hidden=32.
    B, S, D = 2, 8, 32
    x = jax.random.normal(k1, (B, S, D), dtype=jnp.float32)

    out = jax.block_until_ready(custom_sigmoid(x))   # beta defaults to 1 (unused)
    ref = reference(x)
    assert out.shape == (B, S, D)
    assert jnp.allclose(out, ref, atol=1e-5, rtol=1e-5), "mismatch vs reference"

    # Ragged-size path (element count not a multiple of 128 lanes).
    x_tail = jax.random.normal(k2, (2, 7, 9), dtype=jnp.float32)
    out_tail = jax.block_until_ready(custom_sigmoid(x_tail))
    assert jnp.allclose(out_tail, reference(x_tail), atol=1e-5, rtol=1e-5), \
        "mismatch vs reference (ragged tail)"

    print("KERNEL_OK")
</pallas_src>

<mosaic_0001>
module attributes {stable_mosaic.version = 11 : i64} {
  func.func @_custom_sigmoid_kernel(%arg0: i32, %arg1: memref<8x128xf32, #tpu.memory_space<vmem>>, %arg2: memref<8x128xf32, #tpu.memory_space<vmem>>) attributes {dimension_semantics = [#tpu.dimension_semantics<parallel>], iteration_bounds = array<i64: 1>, scalar_prefetch = 0 : i64, scratch_operands = 0 : i64, tpu.core_type = #tpu.core_type<tc>, window_params = [{transform_indices = @transform_0, window_bounds = array<i64: 8, 128>}, {transform_indices = @transform_1, window_bounds = array<i64: 8, 128>}]} {
    %c0 = arith.constant 0 : index
    %c0_0 = arith.constant 0 : index
    %0 = vector.load %arg1[%c0, %c0_0] : memref<8x128xf32, #tpu.memory_space<vmem>>, vector<8x128xf32>
    %1 = arith.negf %0 : vector<8x128xf32>
    %2 = math.exp %1 : vector<8x128xf32>
    %cst = arith.constant 1.000000e+00 : f32
    %3 = vector.broadcast %cst : f32 to vector<8x128xf32>
    %4 = arith.addf %3, %2 : vector<8x128xf32>
    %5 = arith.divf %3, %4 : vector<8x128xf32>
    %cst_1 = arith.constant 2.000000e+00 : f32
    %6 = vector.broadcast %cst_1 : f32 to vector<8x128xf32>
    %7 = arith.mulf %6, %5 : vector<8x128xf32>
    %c0_2 = arith.constant 0 : index
    %c0_3 = arith.constant 0 : index
    %8 = vector.load %arg2[%c0_2, %c0_3] : memref<8x128xf32, #tpu.memory_space<vmem>>, vector<8x128xf32>
    tpu.vector_store %arg2[%c0_2, %c0_3], %7 {strides = array<i32>} : memref<8x128xf32, #tpu.memory_space<vmem>>, vector<8x128xf32>,
    return
  }
  func.func @transform_0(%arg0: i32) -> (i32, i32) {
    %c0_i32 = arith.constant 0 : i32
    %c0_i32_0 = arith.constant 0 : i32
    return %arg0, %c0_i32 : i32, i32
  }
  func.func @transform_1(%arg0: i32) -> (i32, i32) {
    %c0_i32 = arith.constant 0 : i32
    %c0_i32_0 = arith.constant 0 : i32
    return %arg0, %c0_i32 : i32, i32
  }
}

</mosaic_0001>

<bundles_post_ra>
// kernel: tpu_custom_call.1
= control target key start
LH: loop header
LB: loop body
LE: loop exit
PB: predicated region body
PF: predicated region fallthrough
CT: control target
= control target key end

     0   :  { %6 = vsyncpa [#allocation3], 0  ;;  %s153_s0 = inlined_call_operand.hbm [shape: f32[4,128], index: 0, kind: input, shape index: {}]   ;;  %s154_s1 = inlined_call_operand.hbm [shape: f32[4,128], index: 1, kind: output, shape index: {}]  }
   0x1   :  { %7 = vsyncpa [#allocation4], 0 }
   0x2   :  { %11 = vsyncadd [#allocation3], 64  ;;  %s12_s8 = sshll.u32 %s153_s0, 4  ;;  %s127_s9 = smov [#allocation2]   ;;  %s13_s8 = int_to_ptr.hbm [resolvable:$true] %s12_s8 }
   0x3   :  { %s14_s10 = sshll.u32 %s127_s9, 4  ;;  %s128_s11 = smov 64   ;;  %s15_s10 = int_to_ptr.vmem [resolvable:$true] %s14_s10 }
   0x4   :  { %s129_s12 = smov 4  }
   0x5   :  { %20 = dma.hbm_to_vmem [thread:$0]  %s13_s8, 64, %s15_s10, [#allocation3], %s128_s11, %s128_s11, %s129_s12  }
   0x6   :  { %123 = dma.done.wait [#allocation3], 128  }
   0x7   :  { %124 = vsyncadd [#allocation3], 4294967168  ;;  %v25_v0 = vld [vmem:[#allocation2] sm:$0xff] }
   0x8   :  { %v66_v1 = vmul.f32 -1.442695, %v25_v0 }
   0xa   :  { %71 = vpow2.f32 %v66_v1 }
  0x10   :  { %v72_v2 = vpop.eup %71 }
  0x11   :  { %v29_v3 = vadd.f32 1.0, %v72_v2 }
  0x13   :  { %73 = vrcp.f32 %v29_v3  ;;  %v41_v6 = vand.u32 2147483648, %v29_v3  ;;  %vm35_vm0 = vweird.f32 %v29_v3  ;;  %v39_v8 = vand.u32 2147483647, %v29_v3 }
  0x15   :  { %v42_v10 = vor.u32 1.1754944e-38, %v41_v6  ;;  %vm40_vm3 = vcmp.eq.f32.partialorder %v39_v8, 8.507059e+37 }
  0x19   :  { %v74_v4 = vpop.eup %73 }
  0x1a   :  { %v31_v5 = vmul.f32 %v74_v4, %v29_v3  ;;  %vm36_vm1 = vweird.f32 %v74_v4 }
  0x1b   :  { %vm37_vm2 = vmor %vm35_vm0, %vm36_vm1 }
  0x1c   :  { %v32_v7 = vsub.f32 1.0, %v31_v5 }
  0x1e   :  { %v33_v9 = vmul.f32 %v74_v4, %v32_v7 }
  0x20   :  { %v34_v11 = vadd.f32 %v74_v4, %v33_v9 }
  0x22   :  { %v38_v12 = vsel %vm37_vm2, %v74_v4, %v34_v11 }
  0x23   :  { %v43_v13 = vsel %vm40_vm3, %v42_v10, %v38_v12 }
  0x24   :  { %v45_v14 = vmul.f32 2.0, %v43_v13 }
  0x26   :  { %46 = vst [vmem:[#allocation5] sm:$0xff] %v45_v14 }
  0x27   :  { %50 = vsyncadd [#allocation4], 64  ;;  %s53_s14 = sshll.u32 %s154_s1, 4  ;;  %s130_s15 = smov [#allocation5]   ;;  %s54_s14 = int_to_ptr.hbm [resolvable:$true] %s53_s14 }
  0x28   :  { %s51_s16 = sshll.u32 %s130_s15, 4  ;;  %s52_s16 = int_to_ptr.vmem [resolvable:$true] %s51_s16 }
  0x29   :  { %59 = dma.vmem_to_hbm [thread:$0]  %s52_s16, 64, %s54_s14, [#allocation4], %s128_s11, %s128_s11, %s129_s12  }
  0x2a   :  { %125 = dma.done.wait [#allocation4], 128  }
  0x2b   :  { %126 = vsyncadd [#allocation4], 4294967168 }
  0x2c   :  { %64 = vsyncpa [#allocation3], 1 }
  0x2d   :  { %65 = vsyncpa [#allocation4], 1 }

</bundles_post_ra>
